<compile_context>
chip_gen: v6e
topology: v6e:2x2x1
jax: 0.10.0
libtpu: 0.0.40
codegen_flags: <defaults>
</compile_context>

<pallas_src>
import math
import numpy as np
import jax
import jax.numpy as jnp
from jax.experimental import pallas as pl
from jax.experimental.pallas import tpu as pltpu

# ----------------------------------------------------------------------------
# Wavelet filter bank (deterministic, in-script).  'haar' reconstruction bank:
#   rec_lo = [1/sqrt(2), 1/sqrt(2)],  rec_hi = [1/sqrt(2), -1/sqrt(2)]
# (matches pywt.Wavelet('haar').rec_lo / rec_hi)
# ----------------------------------------------------------------------------
_SQRT2_INV = 1.0 / math.sqrt(2.0)
HAAR_REC_LO = [_SQRT2_INV, _SQRT2_INV]
HAAR_REC_HI = [_SQRT2_INV, -_SQRT2_INV]


def build_dwt3d_matrices(depth, height, width,
                         band_low=HAAR_REC_LO, band_high=HAAR_REC_HI):
    """Faithful re-implementation of DWT_3D.get_matrix() (numpy, float64)."""
    band_low = list(band_low)
    band_high = list(band_high)
    assert len(band_low) == len(band_high)
    band_length = len(band_low)
    assert band_length % 2 == 0
    band_length_half = band_length // 2

    L1 = max(height, width)
    L = L1 // 2
    matrix_h = np.zeros((L, L1 + band_length - 2), dtype=np.float64)
    matrix_g = np.zeros((L1 - L, L1 + band_length - 2), dtype=np.float64)
    end = None if band_length_half == 1 else -band_length_half + 1

    index = 0
    for i in range(L):
        for j in range(band_length):
            matrix_h[i, index + j] = band_low[j]
        index += 2
    matrix_h_0 = matrix_h[0:height // 2, 0:height + band_length - 2]
    matrix_h_1 = matrix_h[0:width // 2, 0:width + band_length - 2]
    matrix_h_2 = matrix_h[0:depth // 2, 0:depth + band_length - 2]

    index = 0
    for i in range(L1 - L):
        for j in range(band_length):
            matrix_g[i, index + j] = band_high[j]
        index += 2
    matrix_g_0 = matrix_g[0:height - height // 2, 0:height + band_length - 2]
    matrix_g_1 = matrix_g[0:width - width // 2, 0:width + band_length - 2]
    matrix_g_2 = matrix_g[0:depth - depth // 2, 0:depth + band_length - 2]

    matrix_h_0 = matrix_h_0[:, band_length_half - 1:end]
    matrix_h_1 = np.transpose(matrix_h_1[:, band_length_half - 1:end])
    matrix_h_2 = matrix_h_2[:, band_length_half - 1:end]
    matrix_g_0 = matrix_g_0[:, band_length_half - 1:end]
    matrix_g_1 = np.transpose(matrix_g_1[:, band_length_half - 1:end])
    matrix_g_2 = matrix_g_2[:, band_length_half - 1:end]

    # matrix_low_0 (H/2, H), matrix_low_1 (W, W/2), matrix_low_2 (D/2, D), same for high
    return (matrix_h_0, matrix_h_1, matrix_h_2,
            matrix_g_0, matrix_g_1, matrix_g_2)


# ----------------------------------------------------------------------------
# Pallas kernel: TB volumes (TB, D, H*W) -> packed (TB, D, H*W) sub-band slab.
# Packed layout: depth rows grouped [low D2 rows ; high D-D2 rows]; lane dim is
# the band-permuted (h, w): [LL | LH | HL | HH] blocks, each (h_band * w_band)
# in row-major (p, k) order.
# ----------------------------------------------------------------------------
def _make_dwt3d_kernel(stream_dtype=jnp.float32):
    def _dwt3d_kernel(x_ref, ad_ref, khw_ref, o_ref):
        x = x_ref[...]                               # (TB, D, HW)  float32
        a_d_b = ad_ref[...].astype(stream_dtype)     # (TB, D, D)   rows=[low;high] depth bands
        k_hw = khw_ref[...].astype(stream_dtype)     # (HW, HW)     band-permuted kron(A_h^T, A_w)
        TB, D, HW = x.shape
        f32 = jnp.float32

        # ---- fused height+width pass: ONE lane-dense right matmul ---------
        # (TB, D, HW) -> (TB*D, HW) is a free view when D % 8 == 0 (whole
        # sublane tiles); no swapaxes / lane<->sublane relayout anywhere.
        lhs = x.reshape(TB * D, HW).astype(stream_dtype)
        t = jnp.dot(lhs, k_hw, preferred_element_type=f32)      # (TB*D, HW)
        t = t.reshape(TB, D, HW)

        # ---- depth pass: batched contraction over the SUBLANE (d) axis ----
        # H*W stays on lanes; result lands directly in (TB, D, HW) layout.
        y = jax.lax.dot_general(
            a_d_b, t.astype(stream_dtype),
            dimension_numbers=(((2,), (1,)), ((0,), (0,))),
            preferred_element_type=f32)                          # (TB, D, HW)

        o_ref[...] = y.astype(o_ref.dtype)

    return _dwt3d_kernel


def _vmem_capacity_bytes():
    """Generation-aware VMEM capacity; conservative (v7x, 64 MiB) fallback."""
    try:
        info = pltpu.get_tpu_info()
        cap = getattr(info, "vmem_capacity_bytes", None)
        if cap:
            return int(cap)
    except Exception:
        pass
    return 64 * 1024 * 1024


def _pick_block_batch(B, D, HW, budget_bytes, min_steps=4):
    """Largest divisor TB of B whose padded VMEM footprint fits the budget and
    that still leaves >= min_steps grid steps (pipeline overlap / megacore)."""
    def pad2(sub, lane):
        return ((sub + 7) // 8 * 8) * ((lane + 127) // 128 * 128) * 4

    def est(tb):
        blk = tb * pad2(D, HW)                        # one (tb, D, HW) f32 slab
        io = 2 * blk + 2 * blk                        # double-buffered input + output blocks
        weights = 2 * pad2(HW, HW) + 2 * tb * pad2(D, D)  # kron + tiled depth matrix
        inter = 2 * blk                               # kron result + depth result
        return io + weights + inter

    min_nb = min(min_steps, B)
    tb = 1
    for cand in range(1, B + 1):
        if B % cand == 0 and (B // cand) >= min_nb and est(cand) <= budget_bytes:
            tb = cand
    # TODO(synk): when B is a large prime, pad B to a composite size so per-step
    # work does not collapse to a single volume (TB=1).
    return tb, est(tb)


def dwt_3d(x, matrices, *, vmem_budget_bytes=None, stream_dtype=jnp.float32):
    """x: (N, C, D, H, W) float32 -> 8 tensors of shape (N, C, D/2, H/2, W/2)."""
    ml0, ml1, ml2, mh0, mh1, mh2 = [np.asarray(m, dtype=np.float64) for m in matrices]
    N, C, D, H, W = x.shape
    D2, H2, W2 = ml2.shape[0], ml0.shape[0], ml1.shape[1]
    B = N * C
    HW = H * W

    # Fused square analysis matrices (low bands first, then high).
    a_d = np.concatenate([ml2, mh2], axis=0)        # (D, D)  row q: output depth band
    a_h_t = np.concatenate([ml0, mh0], axis=0).T    # (H, H)  col p: output height band
    a_w = np.concatenate([ml1, mh1], axis=1)        # (W, W)  col k: output width band

    # Height+width Kronecker matrix on the row-major (h, w) flatten (h major,
    # w minor), with columns permuted so each of the four (height, width)
    # sub-bands occupies a contiguous lane range: [LL | LH | HL | HH].
    k_hw = np.kron(a_h_t, a_w)                      # (HW, HW)
    band_hw = [(np.arange(0, H2), np.arange(0, W2)),
               (np.arange(0, H2), np.arange(W2, W)),
               (np.arange(H2, H), np.arange(0, W2)),
               (np.arange(H2, H), np.arange(W2, W))]
    perm = np.concatenate(
        [(ps[:, None] * W + ks[None, :]).reshape(-1) for ps, ks in band_hw])
    k_hw = k_hw[:, perm]
    band_sizes = [len(ps) * len(ks) for ps, ks in band_hw]
    band_offs = np.concatenate([[0], np.cumsum(band_sizes)]).astype(int)
    # TODO(synk): for very large H*W (kron bigger than a few MiB, esp. on v5e),
    # fall back to separate per-axis matmuls instead of the kron weight.

    vmem_cap = _vmem_capacity_bytes()
    budget = int(0.5 * vmem_cap) if vmem_budget_bytes is None else vmem_budget_bytes
    TB, est_bytes = _pick_block_batch(B, D, HW, budget)
    NB = B // TB
    vmem_limit = min(int(0.75 * vmem_cap),
                     max(32 * 1024 * 1024, est_bytes + 8 * 1024 * 1024))

    x_in = x.reshape(B, D, HW)                       # natural, lane-dense layout
    a_d_b = jnp.broadcast_to(jnp.asarray(a_d, jnp.float32)[None], (TB, D, D))
    k_hw_j = jnp.asarray(k_hw, dtype=jnp.float32)

    flops = 2 * B * D * HW * (HW + D)
    bytes_accessed = (2 * B * D * HW * x.dtype.itemsize
                      + 4 * (HW * HW + TB * D * D))

    packed = pl.pallas_call(
        _make_dwt3d_kernel(stream_dtype),
        out_shape=jax.ShapeDtypeStruct((B, D, HW), x.dtype),
        grid_spec=pltpu.PrefetchScalarGridSpec(
            num_scalar_prefetch=0,
            grid=(NB,),
            in_specs=[
                pl.BlockSpec((TB, D, HW), lambda b: (b, 0, 0)),
                pl.BlockSpec((TB, D, D), lambda b: (0, 0, 0)),
                pl.BlockSpec((HW, HW), lambda b: (0, 0)),
            ],
            out_specs=pl.BlockSpec((TB, D, HW), lambda b: (b, 0, 0)),
        ),
        compiler_params=pltpu.CompilerParams(
            dimension_semantics=("parallel",),
            vmem_limit_bytes=vmem_limit),
        cost_estimate=pl.CostEstimate(
            flops=flops, transcendentals=0, bytes_accessed=bytes_accessed),
    )(x_in, a_d_b, k_hw_j)

    # Sub-band extraction: depth bands are contiguous row ranges, (h, w) bands
    # are contiguous lane ranges -> cheap contiguous slices (no strided octant
    # gather).
    y = packed.reshape(N, C, D, HW)
    d_lo, d_hi = slice(0, D2), slice(D2, D)

    def band(dsl, bi):
        ps, ks = band_hw[bi]
        o = int(band_offs[bi])
        z = y[:, :, dsl, o:o + int(band_sizes[bi])]
        return z.reshape(N, C, z.shape[2], len(ps), len(ks))

    return (band(d_lo, 0),   # lfc
            band(d_lo, 1),   # hfc_llh
            band(d_lo, 2),   # hfc_lhl
            band(d_lo, 3),   # hfc_lhh
            band(d_hi, 0),   # hfc_hll
            band(d_hi, 1),   # hfc_hlh
            band(d_hi, 2),   # hfc_hhl
            band(d_hi, 3))   # hfc_hhh


# ----------------------------------------------------------------------------
# Pure-JAX reference (mirrors DWTFunction_3D.forward) for verification.
# ----------------------------------------------------------------------------
def dwt_3d_ref(x, matrices):
    ml0, ml1, ml2, mh0, mh1, mh2 = [jnp.asarray(m, jnp.float32) for m in matrices]
    hp = jax.lax.Precision.HIGHEST
    L = jnp.einsum('ph,ncdhw->ncdpw', ml0, x, precision=hp)
    Hc = jnp.einsum('ph,ncdhw->ncdpw', mh0, x, precision=hp)
    LL = jnp.einsum('ncdpw,wk->ncdpk', L, ml1, precision=hp)
    LH = jnp.einsum('ncdpw,wk->ncdpk', L, mh1, precision=hp)
    HL = jnp.einsum('ncdpw,wk->ncdpk', Hc, ml1, precision=hp)
    HH = jnp.einsum('ncdpw,wk->ncdpk', Hc, mh1, precision=hp)
    d = lambda m, t: jnp.einsum('qd,ncdpk->ncqpk', m, t, precision=hp)
    return (d(ml2, LL), d(ml2, LH), d(ml2, HL), d(ml2, HH),
            d(mh2, LL), d(mh2, LH), d(mh2, HL), d(mh2, HH))


if __name__ == "__main__":
    N, C, D, H, W = 2, 4, 8, 16, 16
    key = jax.random.PRNGKey(0)
    x = jax.random.normal(key, (N, C, D, H, W), dtype=jnp.float32)

    matrices = build_dwt3d_matrices(D, H, W)  # Haar ('haar') wavelet
    outs = jax.block_until_ready(dwt_3d(x, matrices))

    refs = dwt_3d_ref(x, matrices)
    names = ["lfc", "hfc_llh", "hfc_lhl", "hfc_lhh",
             "hfc_hll", "hfc_hlh", "hfc_hhl", "hfc_hhh"]
    for name, o, r in zip(names, outs, refs):
        assert o.shape == (N, C, D // 2, H // 2, W // 2), (name, o.shape)
        assert np.allclose(np.asarray(o), np.asarray(r),
                           rtol=2e-3, atol=2e-3), name

    print("KERNEL_OK")
</pallas_src>

<mosaic_0001>
module attributes {stable_mosaic.version = 11 : i64} {
  func.func @_dwt3d_kernel(%arg0: i32, %arg1: memref<2x8x256xf32, #tpu.memory_space<vmem>>, %arg2: memref<2x8x8xf32, #tpu.memory_space<vmem>>, %arg3: memref<256x256xf32, #tpu.memory_space<vmem>>, %arg4: memref<2x8x256xf32, #tpu.memory_space<vmem>>) attributes {dimension_semantics = [#tpu.dimension_semantics<parallel>], iteration_bounds = array<i64: 4>, scalar_prefetch = 0 : i64, scratch_operands = 0 : i64, tpu.core_type = #tpu.core_type<tc>, window_params = [{transform_indices = @transform_0, window_bounds = array<i64: 2, 8, 256>}, {pipeline_mode = #tpu.pipeline_mode<synchronous>, transform_indices = @transform_1, window_bounds = array<i64: 2, 8, 8>}, {pipeline_mode = #tpu.pipeline_mode<synchronous>, transform_indices = @transform_2, window_bounds = array<i64: 256, 256>}, {transform_indices = @transform_3, window_bounds = array<i64: 2, 8, 256>}]} {
    %c0 = arith.constant 0 : index
    %c0_0 = arith.constant 0 : index
    %c0_1 = arith.constant 0 : index
    %0 = vector.load %arg1[%c0, %c0_0, %c0_1] : memref<2x8x256xf32, #tpu.memory_space<vmem>>, vector<2x8x256xf32>
    %c0_2 = arith.constant 0 : index
    %c0_3 = arith.constant 0 : index
    %c0_4 = arith.constant 0 : index
    %1 = vector.load %arg2[%c0_2, %c0_3, %c0_4] : memref<2x8x8xf32, #tpu.memory_space<vmem>>, vector<2x8x8xf32>
    %c0_5 = arith.constant 0 : index
    %c0_6 = arith.constant 0 : index
    %2 = vector.load %arg3[%c0_5, %c0_6] : memref<256x256xf32, #tpu.memory_space<vmem>>, vector<256x256xf32>
    %3 = vector.shape_cast %0 : vector<2x8x256xf32> to vector<16x256xf32>
    %cst = arith.constant dense<0.000000e+00> : vector<16x256xf32>
    %4 = tpu.matmul %3, %2, %cst {dimension_numbers = #tpu.dot_dimension_numbers<[1], [0], [0], [1], [0, 0, 1, 1], [], []>} : vector<16x256xf32>, vector<256x256xf32>, vector<16x256xf32> -> vector<16x256xf32>
    %5 = vector.shape_cast %4 : vector<16x256xf32> to vector<2x8x256xf32>
    %cst_7 = arith.constant dense<0.000000e+00> : vector<2x8x256xf32>
    %6 = tpu.matmul %1, %5, %cst_7 {dimension_numbers = #tpu.dot_dimension_numbers<[2], [1], [1], [2], [0, 0, 0, 1, 1, 2], [0], [0]>} : vector<2x8x8xf32>, vector<2x8x256xf32>, vector<2x8x256xf32> -> vector<2x8x256xf32>
    %c0_8 = arith.constant 0 : index
    %c0_9 = arith.constant 0 : index
    %c0_10 = arith.constant 0 : index
    %7 = vector.load %arg4[%c0_8, %c0_9, %c0_10] : memref<2x8x256xf32, #tpu.memory_space<vmem>>, vector<2x8x256xf32>
    tpu.vector_store %arg4[%c0_8, %c0_9, %c0_10], %6 {strides = array<i32>} : memref<2x8x256xf32, #tpu.memory_space<vmem>>, vector<2x8x256xf32>,
    return
  }
  func.func @transform_0(%arg0: i32) -> (i32, i32, i32) {
    %c0_i32 = arith.constant 0 : i32
    %c0_i32_0 = arith.constant 0 : i32
    %c0_i32_1 = arith.constant 0 : i32
    return %arg0, %c0_i32, %c0_i32_0 : i32, i32, i32
  }
  func.func @transform_1(%arg0: i32) -> (i32, i32, i32) {
    %c0_i32 = arith.constant 0 : i32
    %c0_i32_0 = arith.constant 0 : i32
    %c0_i32_1 = arith.constant 0 : i32
    %c0_i32_2 = arith.constant 0 : i32
    return %c0_i32, %c0_i32_0, %c0_i32_1 : i32, i32, i32
  }
  func.func @transform_2(%arg0: i32) -> (i32, i32) {
    %c0_i32 = arith.constant 0 : i32
    %c0_i32_0 = arith.constant 0 : i32
    %c0_i32_1 = arith.constant 0 : i32
    return %c0_i32, %c0_i32_0 : i32, i32
  }
  func.func @transform_3(%arg0: i32) -> (i32, i32, i32) {
    %c0_i32 = arith.constant 0 : i32
    %c0_i32_0 = arith.constant 0 : i32
    %c0_i32_1 = arith.constant 0 : i32
    return %arg0, %c0_i32, %c0_i32_0 : i32, i32, i32
  }
}

</mosaic_0001>

<bundles_post_ra>
// kernel: tpu_custom_call.1
= control target key start
LH: loop header
LB: loop body
LE: loop exit
PB: predicated region body
PF: predicated region fallthrough
CT: control target
= control target key end

     0   :  { %8 = vsyncpa [#allocation3], 0  ;;  %s1111_s0 = inlined_call_operand.hbm [shape: f32[8,8,256], index: 0, kind: input, shape index: {}]   ;;  %s1112_s1 = inlined_call_operand.hbm [shape: f32[2,8,8], index: 1, kind: input, shape index: {}]   ;;  %s1113_s2 = inlined_call_operand.hbm [shape: f32[256,256], index: 2, kind: input, shape index: {}]   ;;  %s1114_s3 = inlined_call_operand.hbm [shape: f32[8,8,256], index: 3, kind: output, shape index: {}]  }
   0x1   :  { %10 = vsyncpa [#allocation3 + $0x1], 0 }
   0x2   :  { %11 = vsyncpa [#allocation6], 0 }
   0x3   :  { %12 = vsyncpa [#allocation4], 0 }
   0x4   :  { %14 = vsyncpa [#allocation4 + $0x1], 0  ;;  %s909_s12 = smov 0   ;;  %s911_s13 = smov 0  }
   0x5   :  { %s913_s14 = smov 0   ;;  %s915_s15 = smov 0  }
   0x6 LB: > { %s930_s16 = sadd.s32 4294967295, %s876_s15   ;;  %s628_s17 = sadd.s32 4294967294, %s876_s15   ;;  %s876_s15 = sphi %s915_s15, %s1135_s15   ;;  %s872_s14 = sphi %s913_s14, %s1134_s14   ;;  %s868_s13 = sphi %s911_s13, %s1133_s13   ;;  %s864_s12 = sphi %s909_s12, %s1132_s12  }
   0x7   : > { %p40_p0 = scmp.ne.s32.totalorder %s868_s13, %s864_s12  ;;  %p1115_p1 = scmp.eq.s32.totalorder %s930_s16, 0 }
   0x8   : > { %p112_p3 = scmp.eq.s32.totalorder %s628_s17, 3  ;;  %p629_p5 = scmp.ge.s32.totalorder %s876_s15, 1 }
   0x9   : > { %p939_p4 = por %p1115_p1, %p40_p0  ;;  %p119_p7 = scmp.lt.s32.totalorder %s876_s15, 5 }
   0xa   : > { %p944_p6 = por %p112_p3, %p40_p0  ;;  %s878_s21 = smov [#allocation5]  }
   0xb   : > { %s1119_s18 = scalar_select %p939_p4, 1, 0 }
   0xc   : > { %s1120_s19 = scalar_select %p944_p6, 1, 0 }
   0xd   : > { %p949_p8 = pnand %p629_p5, %p119_p7  ;;  %s131_s22 = sshll.u32 %s878_s21, 4  ;;  %s132_s22 = int_to_ptr.vmem [resolvable:$true] %s131_s22 }
   0xe   : > { %s879_s24 = smov [#allocation7]   ;;  %s739_s26 = scalar_lea.vmem %s132_s22, 256 }
   0xf   : > { %s1121_s20 = scalar_select %p949_p8, 1, 0 }
  0x10   : > { %p666_p9 = pneg %p949_p8  ;;  %s144_s25 = sshll.u32 %s879_s24, 4  ;;  %s145_s25 = int_to_ptr.vmem [resolvable:$true] %s144_s25 }
  0x11   : > { %p740_p12 = scmp.ne.s32.totalorder %s132_s22, %s739_s26  ;;  %p747_p3 = scmp.lt.s32.totalorder %s132_s22, %s132_s22 }
  0x12   : > { %p957_p10 = pnand %p666_p9, %p1115_p1  ;;  %p748_p5 = scmp.lt.s32.totalorder %s739_s26, %s739_s26 }
  0x14   : > { %p730_p11 = pneg %p957_p10  ;;  %p749_p7 = por %p748_p5, %p747_p3 }
  0x16   : > { %p742_p13 = pnand %p740_p12, %p730_p11 }
  0x18   : > { %p743_p0 = pneg %p742_p13 }
  0x1a   : > { %p750_p9 = pnand %p749_p7, %p743_p0 }
  0x1c   : > { %753 = shalt.err (!%p750_p9)
}
  0x1d   : > { %s880_s27 = smov 128   ;;  %s881_s28 = smov 8  }
  0x1e   : > { %669 = dma.hbm_to_vmem [thread:$0]  (!%p957_p10), %s1112_s1, 256, %s132_s22, [#allocation6], %s880_s27, %s880_s27, %s881_s28  }
  0x1f   : > { %s765_s4 = scalar_lea.vmem %s145_s25, 8192  ;;  %p773_p2 = scmp.lt.s32.totalorder %s145_s25, %s145_s25 }
  0x20   : > { %p766_p1 = scmp.ne.s32.totalorder %s145_s25, %s765_s4  ;;  %p774_p6 = scmp.lt.s32.totalorder %s765_s4, %s765_s4 }
  0x22   : > { %p768_p12 = pnand %p766_p1, %p730_p11  ;;  %p775_p3 = por %p774_p6, %p773_p2 }
  0x24   : > { %p769_p13 = pneg %p768_p12 }
  0x26   : > { %p776_p0 = pnand %p775_p3, %p769_p13 }
  0x28   : > { %779 = shalt.err (!%p776_p0)
}
  0x29   : > { %s882_s5 = smov 256   ;;  %s883_s6 = smov 16  }
  0x2a   : > { %672 = dma.hbm_to_vmem [thread:$0]  (!%p957_p10), %s1113_s2, 8192, %s145_s25, [#allocation6], %s882_s5, %s882_s5, %s883_s6  }
  0x2b   : > { %s983_s9 = sadd.s32 1, %s876_s15   ;;  %s27_s11 = sadd.s32 1, %s872_s14 }
  0x2c   : > { %s24_s10 = ssub.s32 %s876_s15, %s983_s9  ;;  %p34_p2 = scmp.ne.s32.totalorder %s872_s14, %s868_s13 }
  0x2d   : > { %p25_p1 = scmp.eq.s32.totalorder %s24_s10, 0  ;;  %p35_p6 = scmp.eq.s32.totalorder %s876_s15, 0 }
  0x2e   : > { %p1123_p5 = scmp.eq.s32.totalorder %s930_s16, 3  ;;  %p683_p9 = scmp.lt.s32.totalorder %s876_s15, 4 }
  0x2f   : > { %s992_s17 = scalar_select %p25_p1, %s872_s14, %s27_s11  }
  0x30   : > { %p36_p11 = por %p35_p6, %p34_p2  ;;  %p996_p7 = por %p1123_p5, %p34_p2 }
  0x31   : > { %s158_s22 = sand.u32 1, %s872_s14   ;;  %s651_s24 = sshll.u32 %s876_s15, 9 }
  0x32   : > { %s1124_s21 = scalar_select %p996_p7, 1, 0 }
  0x33   : > { %s633_s23 = sshll.u32 %s158_s22, 5  ;;  %s1006_s27 = scalar_lea.hbm %s1111_s0, %s651_s24 }
  0x34   : > { %s162_s28 = scalar_lea.vmem [#allocation2], %s633_s23  ;;  %p1010_p10 = pnand %p683_p9, %p36_p11 }
  0x35   : > { %s170_s29 = sshll.u32 %s162_s28, 4  ;;  %s1014_s4 = scalar_lea.sflag [#allocation3], %s158_s22  ;;  %s1008_s29 = int_to_ptr.vmem [resolvable:$true] %s170_s29 }
  0x36   : > { %s780_s7 = scalar_lea.hbm %s1006_s27, 512  ;;  %p782_p13 = pneg %p1010_p10 }
  0x37   : > { %p781_p12 = scmp.ne.s32.totalorder %s1006_s27, %s780_s7  ;;  %s785_s11 = scalar_lea.hbm %s1111_s0, 2048 }
  0x38   : > { %p786_p1 = scmp.lt.s32.totalorder %s1006_s27, %s1111_s0  ;;  %p787_p2 = scmp.lt.s32.totalorder %s785_s11, %s780_s7 }
  0x39   : > { %p783_p3 = pnand %p782_p13, %p781_p12 }
  0x3a   : > { %p788_p6 = por %p787_p2, %p786_p1 }
  0x3b   : > { %p784_p0 = pneg %p783_p3 }
  0x3d   : > { %p789_p11 = pnand %p788_p6, %p784_p0 }
  0x3f   : > { %792 = shalt.err (!%p789_p11)
}
  0x40   : > { %s793_s22 = scalar_lea.vmem %s1008_s29, 512  ;;  %s884_s25 = smov [#allocation2]  }
  0x41   : > { %p794_p5 = scmp.ne.s32.totalorder %s1008_s29, %s793_s22  ;;  %s798_s26 = sshll.u32 %s884_s25, 4  ;;  %s799_s26 = int_to_ptr.vmem [resolvable:$false] %s798_s26 }
  0x42   : > { %s800_s28 = scalar_lea.vmem %s799_s26, 1024  ;;  %p801_p3 = scmp.lt.s32.totalorder %s1008_s29, %s799_s26 }
  0x43   : > { %p796_p9 = pnand %p794_p5, %p782_p13  ;;  %p802_p7 = scmp.lt.s32.totalorder %s800_s28, %s793_s22 }
  0x45   : > { %p797_p12 = pneg %p796_p9  ;;  %p803_p4 = por %p802_p7, %p801_p3 }
  0x47   : > { %p804_p8 = pnand %p803_p4, %p797_p12 }
  0x49   : > { %807 = shalt.err (!%p804_p8)
}
  0x4a   : > { %676 = dma.hbm_to_vmem [thread:$0]  (!%p1010_p10), %s1006_s27, 512, %s1008_s29, %s1014_s4, %s882_s5, %s882_s5, %s883_s6  }
  0x4b   : > { %p1126_p13 = scmp.ne.s32.totalorder %s1121_s20, 0 }
  0x4c   : > { %s1041_s7 = sand.u32 (!%p1126_p13), 1, %s868_s13   ;;  %p1127_p4 = scmp.ne.s32.totalorder (!%p1126_p13), %s1119_s18, 0 }
  0x4d   : > { %182 = sbr.rel (%p1126_p13) target bundleno = 561 (0x231), region = 32  ;;  %s638_s8 = sshll.u32 (!%p1126_p13), %s1041_s7, 5 }
  0x4e   : > { %s185_s10 = scalar_lea.sflag (!%p1126_p13), [#allocation3], %s1041_s7  ;;  %s1047_s30 = scalar_lea.vmem (!%p1126_p13), [#allocation2], %s638_s8 }
  0x52   : > { %851 = dma.done.wait (%p1127_p4), %s185_s10, 512  }
  0x53   : > { %853 = vsyncadd (%p1127_p4), %s185_s10, 4294966784  ;;  %p1128_p8 = scmp.eq.s32.totalorder %s930_s16, 0 }
  0x55   : > { %855 = dma.done.wait (%p1128_p8), [#allocation6], 8448   ;;  %p1129_p7 = pmov %p1128_p8 }
  0x56   : > { %v258_v0 = vld [vmem:[#allocation7 + $0xf8] sm:$0xff]  ;;  %v257_v1 = vld [vmem:[#allocation7 + $0xf0] sm:$0xff]  ;;  %v256_v2 = vld [vmem:[#allocation7 + $0xe8] sm:$0xff]  ;;  %vm368_vm0 = vcmask 64512   ;;  %s218_s18 = scalar_lea.vmem [#allocation8], %s638_s8  ;;  %s653_s5 = sshll.u32 %s930_s16, 9 }
  0x57   : > { %857 = vsyncadd (%p1129_p7), [#allocation6], 4294958848  ;;  %291 = vmatprep.subr.mxu0 %v258_v0  ;;  %v255_v3 = vld [vmem:[#allocation7 + $0xe0] sm:$0xff]  ;;  %v254_v4 = vld [vmem:[#allocation7 + $0xd8] sm:$0xff]  ;;  %s536_s20 = sshll.u32 %s218_s18, 4  ;;  %s1069_s29 = scalar_lea.hbm %s1114_s3, %s653_s5  ;;  %s1064_s20 = int_to_ptr.vmem [resolvable:$true] %s536_s20 }
  0x58   : > { %292 = vmatpush1.msra.mxu0 %v257_v1  ;;  %v253_v5 = vld [vmem:[#allocation7 + $0xd0] sm:$0xff]  ;;  %v252_v6 = vld [vmem:[#allocation7 + $0xc8] sm:$0xff]  ;;  %v251_v7 = vld [vmem:[#allocation7 + $0xc0] sm:$0xff]  ;;  %s522_s4 = scalar_lea.sflag [#allocation4], %s1041_s7  ;;  %s808_s11 = scalar_lea.vmem %s1064_s20, 512 }
  0x59   : > { %293 = vmatprep.subr.mxu0 %v256_v2  ;;  %v250_v8 = vld [vmem:[#allocation7 + $0xb8] sm:$0xff]  ;;  %v249_v9 = vld [vmem:[#allocation7 + $0xb0] sm:$0xff]  ;;  %v248_v10 = vld [vmem:[#allocation7 + $0xa8] sm:$0xff]  ;;  %p809_p10 = scmp.ne.s32.totalorder %s1064_s20, %s808_s11  ;;  %p1130_p0 = scmp.ne.s32.totalorder %s1124_s21, 0 }
  0x5a   : > { %294 = vmatpush1.msra.mxu0 %v255_v3  ;;  %v247_v11 = vld [vmem:[#allocation7 + $0xa0] sm:$0xff]  ;;  %v246_v12 = vld [vmem:[#allocation7 + $0x98] sm:$0xff]  ;;  %v245_v13 = vld [vmem:[#allocation7 + $0x90] sm:$0xff]  ;;  %s886_s16 = smov [#allocation8]  }
  0x5b   : > { %295 = vmatprep.subr.mxu0 %v254_v4  ;;  %v244_v14 = vld [vmem:[#allocation7 + $0x88] sm:$0xff]  ;;  %v243_v15 = vld [vmem:[#allocation7 + $0x80] sm:$0xff]  ;;  %v242_v16 = vld [vmem:[#allocation7 + $0x78] sm:$0xff]  ;;  %v885_v4 = vmov 0.0   ;;  %p810_p1 = pnand %p809_p10, %p1130_p0  ;;  %s812_s23 = sshll.u32 %s886_s16, 4  ;;  %s813_s23 = int_to_ptr.vmem [resolvable:$false] %s812_s23 }
  0x5c   : > { %296 = vmatpush1.msra.mxu0 %v253_v5  ;;  %v241_v17 = vld [vmem:[#allocation7 + $0x70] sm:$0xff]  ;;  %v240_v18 = vld [vmem:[#allocation7 + $0x68] sm:$0xff]  ;;  %v239_v19 = vld [vmem:[#allocation7 + $0x60] sm:$0xff]  ;;  %436 = vmatprep.mubr.f32.mxu1 %v885_v4  ;;  %s814_s24 = scalar_lea.vmem %s813_s23, 1024  ;;  %p815_p6 = scmp.lt.s32.totalorder %s1064_s20, %s813_s23 }
  0x5d   : > { %297 = vmatprep.subr.mxu0 %v252_v6  ;;  %v238_v20 = vld [vmem:[#allocation7 + $0x58] sm:$0xff]  ;;  %v237_v21 = vld [vmem:[#allocation7 + $0x50] sm:$0xff]  ;;  %v236_v22 = vld [vmem:[#allocation7 + $0x48] sm:$0xff]  ;;  %p811_p2 = pneg %p810_p1  ;;  %p816_p11 = scmp.lt.s32.totalorder %s814_s24, %s808_s11 }
  0x5e   : > { %298 = vmatpush1.msra.mxu0 %v251_v7  ;;  %v235_v23 = vld [vmem:[#allocation7 + $0x40] sm:$0xff]  ;;  %v222_v24 = vld [vmem:[%s1047_s30 + $0x8] sm:$0xff]  ;;  %v233_v26 = vld [vmem:[#allocation7 + $0x30] sm:$0xff] }
  0x5f   : > { %299 = vmatprep.subr.mxu0 %v250_v8  ;;  %v234_v25 = vld [vmem:[#allocation7 + $0x38] sm:$0xff]  ;;  %355 = vmatprep.mubr.f32.mxu0 %v222_v24  ;;  %v232_v27 = vld [vmem:[#allocation7 + $0x28] sm:$0xff]  ;;  %v231_v28 = vld [vmem:[#allocation7 + $0x20] sm:$0xff]  ;;  %p817_p5 = por %p816_p11, %p815_p6 }
  0x60   : > { %300 = vmatpush1.msra.mxu0 %v249_v9  ;;  %v230_v29 = vld [vmem:[#allocation7 + $0x18] sm:$0xff]  ;;  %v229_v30 = vld [vmem:[#allocation7 + $0x10] sm:$0xff]  ;;  %v228_v31 = vld [vmem:[#allocation7 + $0x8] sm:$0xff] }
  0x61   : > { %301 = vmatprep.subr.mxu0 %v248_v10  ;;  %v227_v32 = vld [vmem:[#allocation7] sm:$0xff]  ;;  %v290_v33 = vld [vmem:[#allocation7 + $0x1f8] sm:$0xff]  ;;  %v289_v34 = vld [vmem:[#allocation7 + $0x1f0] sm:$0xff]  ;;  %p818_p9 = pnand %p817_p5, %p811_p2 }
  0x62   : > { %302 = vmatpush1.msra.mxu0 %v247_v11  ;;  %v288_v35 = vld [vmem:[#allocation7 + $0x1e8] sm:$0xff]  ;;  %v287_v36 = vld [vmem:[#allocation7 + $0x1e0] sm:$0xff]  ;;  %v286_v37 = vld [vmem:[#allocation7 + $0x1d8] sm:$0xff] }
  0x63   : > { %303 = vmatprep.subr.mxu0 %v246_v12  ;;  %v285_v38 = vld [vmem:[#allocation7 + $0x1d0] sm:$0xff]  ;;  %v284_v39 = vld [vmem:[#allocation7 + $0x1c8] sm:$0xff]  ;;  %v283_v40 = vld [vmem:[#allocation7 + $0x1c0] sm:$0xff] }
  0x64   : > { %304 = vmatpush1.msra.mxu0 %v245_v13  ;;  %v282_v41 = vld [vmem:[#allocation7 + $0x1b8] sm:$0xff]  ;;  %v281_v42 = vld [vmem:[#allocation7 + $0x1b0] sm:$0xff]  ;;  %v280_v43 = vld [vmem:[#allocation7 + $0x1a8] sm:$0xff] }
  0x65   : > { %305 = vmatprep.subr.mxu0 %v244_v14  ;;  %v279_v44 = vld [vmem:[#allocation7 + $0x1a0] sm:$0xff]  ;;  %v278_v45 = vld [vmem:[#allocation7 + $0x198] sm:$0xff]  ;;  %v277_v46 = vld [vmem:[#allocation7 + $0x190] sm:$0xff] }
  0x66   : > { %306 = vmatpush1.msra.mxu0 %v243_v15  ;;  %v276_v47 = vld [vmem:[#allocation7 + $0x188] sm:$0xff]  ;;  %v275_v48 = vld [vmem:[#allocation7 + $0x180] sm:$0xff]  ;;  %v274_v49 = vld [vmem:[#allocation7 + $0x178] sm:$0xff] }
  0x67   : > { %307 = vmatprep.subr.mxu0 %v242_v16  ;;  %v273_v50 = vld [vmem:[#allocation7 + $0x170] sm:$0xff]  ;;  %v272_v51 = vld [vmem:[#allocation7 + $0x168] sm:$0xff]  ;;  %v271_v52 = vld [vmem:[#allocation7 + $0x160] sm:$0xff] }
  0x68   : > { %308 = vmatpush1.msra.mxu0 %v241_v17  ;;  %v270_v53 = vld [vmem:[#allocation7 + $0x158] sm:$0xff]  ;;  %v269_v54 = vld [vmem:[#allocation7 + $0x150] sm:$0xff]  ;;  %v268_v55 = vld [vmem:[#allocation7 + $0x148] sm:$0xff] }
  0x69   : > { %309 = vmatprep.subr.mxu0 %v240_v18  ;;  %v267_v56 = vld [vmem:[#allocation7 + $0x140] sm:$0xff]  ;;  %v266_v57 = vld [vmem:[#allocation7 + $0x138] sm:$0xff]  ;;  %v265_v58 = vld [vmem:[#allocation7 + $0x130] sm:$0xff] }
  0x6a   : > { %310 = vmatpush1.msra.mxu0 %v239_v19  ;;  %v264_v59 = vld [vmem:[#allocation7 + $0x128] sm:$0xff]  ;;  %v263_v60 = vld [vmem:[#allocation7 + $0x120] sm:$0xff]  ;;  %v262_v61 = vld [vmem:[#allocation7 + $0x118] sm:$0xff] }
  0x6b   : > { %311 = vmatprep.subr.mxu0 %v238_v20  ;;  %v261_v62 = vld [vmem:[#allocation7 + $0x110] sm:$0xff]  ;;  %v260_v63 = vld [vmem:[#allocation7 + $0x108] sm:$0xff]  ;;  %v259_v0 = vld [vmem:[#allocation7 + $0x100] sm:$0xff] }
  0x6c   : > { %312 = vmatpush1.msra.mxu0 %v237_v21  ;;  %v221_v1 = vld [vmem:[%s1047_s30] sm:$0xff]  ;;  %v224_v2 = vld [vmem:[%s1047_s30 + $0x18] sm:$0xff]  ;;  %v223_v3 = vld [vmem:[%s1047_s30 + $0x10] sm:$0xff] }
  0x6d   : > { %313 = vmatprep.subr.mxu0 %v236_v22  ;;  %v225_v7 = vld [vmem:[#allocation5] sm:$0xff]  ;;  %v226_v10 = vld [vmem:[#allocation5 + $0x8] sm:$0xff] }
  0x6e   : > { %314 = vmatpush1.msra.mxu0 %v235_v23 }
  0x6f   : > { %315 = vmatprep.subr.mxu0 %v234_v25 }
  0x70   : > { %316 = vmatpush1.msra.mxu0 %v233_v26 }
  0x71   : > { %317 = vmatprep.subr.mxu0 %v232_v27 }
  0x72   : > { %318 = vmatpush1.msra.mxu0 %v231_v28 }
  0x73   : > { %319 = vmatprep.subr.mxu0 %v230_v29 }
  0x74   : > { %320 = vmatpush1.msra.mxu0 %v229_v30 }
  0x75   : > { %321 = vmatprep.subr.mxu0 %v228_v31 }
  0x76   : > { %322 = vmatpush1.msra.mxu0 %v227_v32 }
  0x77   : > { %323 = vmatprep.subr.mxu0 %v290_v33 }
  0x78   : > { %324 = vmatpush2.msra.mxu0 %v289_v34 }
  0x79   : > { %325 = vmatprep.subr.mxu0 %v288_v35 }
  0x7a   : > { %326 = vmatpush2.msra.mxu0 %v287_v36 }
  0x7b   : > { %327 = vmatprep.subr.mxu0 %v286_v37 }
  0x7c   : > { %328 = vmatpush2.msra.mxu0 %v285_v38 }
  0x7d   : > { %329 = vmatprep.subr.mxu0 %v284_v39 }
  0x7e   : > { %330 = vmatpush2.msra.mxu0 %v283_v40 }
  0x7f   : > { %331 = vmatprep.subr.mxu0 %v282_v41 }
  0x80   : > { %332 = vmatpush2.msra.mxu0 %v281_v42 }
  0x81   : > { %333 = vmatprep.subr.mxu0 %v280_v43 }
  0x82   : > { %334 = vmatpush2.msra.mxu0 %v279_v44 }
  0x83   : > { %335 = vmatprep.subr.mxu0 %v278_v45 }
  0x84   : > { %336 = vmatpush2.msra.mxu0 %v277_v46 }
  0x85   : > { %337 = vmatprep.subr.mxu0 %v276_v47 }
  0x86   : > { %338 = vmatpush2.msra.mxu0 %v275_v48 }
  0x87   : > { %339 = vmatprep.subr.mxu0 %v274_v49 }
  0x88   : > { %340 = vmatpush2.msra.mxu0 %v273_v50 }
  0x89   : > { %341 = vmatprep.subr.mxu0 %v272_v51 }
  0x8a   : > { %342 = vmatpush2.msra.mxu0 %v271_v52 }
  0x8b   : > { %343 = vmatprep.subr.mxu0 %v270_v53 }
  0x8c   : > { %344 = vmatpush2.msra.mxu0 %v269_v54 }
  0x8d   : > { %345 = vmatprep.subr.mxu0 %v268_v55 }
  0x8e   : > { %346 = vmatpush2.msra.mxu0 %v267_v56 }
  0x8f   : > { %347 = vmatprep.subr.mxu0 %v266_v57 }
  0x90   : > { %348 = vmatpush2.msra.mxu0 %v265_v58 }
  0x91   : > { %349 = vmatprep.subr.mxu0 %v264_v59 }
  0x92   : > { %350 = vmatpush2.msra.mxu0 %v263_v60 }
  0x93   : > { %351 = vmatprep.subr.mxu0 %v262_v61 }
  0x94   : > { %352 = vmatpush2.msra.mxu0 %v261_v62 }
  0x95   : > { %353 = vmatprep.subr.mxu0 %v260_v63 }
  0x96   : > { %354 = vmatpush2.msra.mxu0 %v259_v0 }
  0x97   : > { %356 = vmatmul.mubr.f32.vlgmr.msra.gmra.mxu0 %v221_v1 }
  0x98   : > { %361 = vmatprep.mubr.f32.mxu0 %v224_v2 }
  0x9b   : > { %362 = vmatmul.mubr.f32.gmra.mxu0 %v223_v3 }
 0x157   : > { %v357_v5 = vpop.f32.mrf.mxu0 }
 0x159   : > { %v359_v6 = vpop.f32.mrf.mxu0 }
 0x15a   : > { %402 = vmatprep.subr.mxu1 %v359_v6 }
 0x15b   : > { %v363_v8 = vpop.f32.mrf.mxu0  ;;  %403 = vmatpush1.msra.mxu1 %v357_v5 }
 0x15c   : > { %642 = vmatmul.mubr.msk.f32.vlgmr.msra.gmra.mxu1 %vm368_vm0, %v225_v7 }
 0x15d   : > { %v365_v9 = vpop.f32.mrf.mxu0  ;;  %510 = vmatprep.mubr.f32.mxu1 %v885_v4 }
 0x15e   : > { %476 = vmatprep.subr.mxu1 %v365_v9 }
 0x15f   : > { %477 = vmatpush1.msra.mxu1 %v363_v8 }
 0x160   : > { %643 = vmatmul.mubr.msk.f32.vlgmr.msra.gmra.mxu1 %vm368_vm0, %v226_v10 }
 0x21c   : > { %v438_v11 = vpop.f32.mrf.mxu1 }
 0x21d   : > { %517 = vst [vmem:[%s218_s18] sm:$0xff] %v438_v11 }
 0x21e   : > { %v440_v12 = vpop.f32.mrf.mxu1 }
 0x21f   : > { %518 = vst [vmem:[%s218_s18 + $0x8] sm:$0xff] %v440_v12 }
 0x220   : > { %v512_v13 = vpop.f32.mrf.mxu1 }
 0x221   : > { %519 = vst [vmem:[%s218_s18 + $0x10] sm:$0xff] %v512_v13 }
 0x222   : > { %v514_v14 = vpop.f32.mrf.mxu1 }
 0x223   : > { %520 = vst [vmem:[%s218_s18 + $0x18] sm:$0xff] %v514_v14 }
 0x224   : > { %821 = shalt.err (!%p818_p9)
}
 0x225   : > { %s822_s22 = scalar_lea.hbm %s1069_s29, 512  ;;  %s826_s28 = scalar_lea.hbm %s1114_s3, 2048 }
 0x226   : > { %p823_p12 = scmp.ne.s32.totalorder %s1069_s29, %s822_s22  ;;  %p827_p4 = scmp.lt.s32.totalorder %s1069_s29, %s1114_s3 }
 0x227   : > { %p828_p8 = scmp.lt.s32.totalorder %s826_s28, %s822_s22 }
 0x228   : > { %p824_p3 = pnand %p823_p12, %p1130_p0 }
 0x229   : > { %p829_p7 = por %p828_p8, %p827_p4 }
 0x22a   : > { %p825_p13 = pneg %p824_p3 }
 0x22c   : > { %p830_p10 = pnand %p829_p7, %p825_p13 }
 0x22e   : > { %833 = shalt.err (!%p830_p10)
}
 0x22f   : > { %s887_s30 = smov 256   ;;  %s888_s18 = smov 16  }
 0x230   : > { %664 = dma.vmem_to_hbm [thread:$0]  (%p1130_p0), %s1064_s20, 512, %s1069_s29, %s522_s4, %s887_s30, %s887_s30, %s888_s18  }
 0x231 PF: > { %p686_p1 = scmp.ge.s32.totalorder %s876_s15, 2  ;;  %s551_s5 = sand.u32 1, %s864_s12  }
 0x232   : > { %p1131_p2 = scmp.ne.s32.totalorder %s1120_s19, 0  ;;  %s552_s6 = scalar_lea.sflag [#allocation4], %s551_s5 }
 0x234   : > { %p678_p6 = pnand %p686_p1, %p1131_p2 }
 0x236   : > { %p679_p11 = pneg %p678_p6 }
 0x238   : > { %859 = dma.done.wait (%p679_p11), %s552_s6, 512  }
 0x239   : > { %861 = vsyncadd (%p679_p11), %s552_s6, 4294966784  ;;  %p17_p5 = scmp.ge.s32.totalorder %s983_s9, 6   ;;  %s1132_s12 = smov %s868_s13 }
 0x23a   : > { %s1133_s13 = smov %s872_s14  ;;  %s1134_s14 = smov %s992_s17 }
 0x23b   : > { %s1135_s15 = smov %s983_s9  ;;  %19 = sbr.rel (!%p17_p5) target bundleno = 6 (0x6), region = 85 }
 0x240   :  { %557 = vsyncpa [#allocation3], 1 }
 0x241   :  { %559 = vsyncpa [#allocation3 + $0x1], 1 }
 0x242   :  { %560 = vsyncpa [#allocation6], 1 }
 0x243   :  { %561 = vsyncpa [#allocation4], 1 }
 0x244   :  { %563 = vsyncpa [#allocation4 + $0x1], 1 }

</bundles_post_ra>
